<compile_context>
chip_gen: v7x
topology: tpu7x:2x2x1
jax: 0.10.0
libtpu: 0.0.40
codegen_flags: <defaults>
</compile_context>

<pallas_src>
import math

import jax
import jax.numpy as jnp
from jax.experimental import pallas as pl
from jax.experimental.pallas import tpu as pltpu

_LANE = 128
_SUBLANE = 8


def _round_up(x, m):
    return ((x + m - 1) // m) * m


def _padded_tile_bytes(shape, itemsize):
    """Bytes of a VMEM tile after (8, 128) layout padding (f32 layout)."""
    dims = list(shape)
    dims[-1] = _round_up(dims[-1], _LANE)
    if len(dims) >= 2:
        dims[-2] = _round_up(dims[-2], _SUBLANE)
    return math.prod(dims) * itemsize


def _vmem_capacity_bytes():
    """Generation-aware VMEM capacity; conservative (v7x, 64 MiB) fallback."""
    try:
        info = pltpu.get_tpu_info()
        cap = getattr(info, "vmem_capacity_bytes", None)
        if cap:
            return int(cap)
    except Exception:
        pass
    return 64 * 1024 * 1024


def _pick_pack_size(nb, din, dout, itemsize, budget_bytes):
    """How many groups to fuse into one block-diagonal weight tile."""

    def pack_w_bytes(g):
        return _padded_tile_bytes((g * din, g * dout), itemsize)

    # Fusing all groups makes the flattened x/out/bias blocks cover their full
    # last dim, so the (8, 128) alignment constraint does not apply.
    if pack_w_bytes(nb) <= budget_bytes // 3:
        return nb
    # Partial packs: flattened blocks are slices of the last dim and must be
    # 128-lane aligned (the biggest measured store-bandwidth lever).
    for g in range(nb - 1, 0, -1):
        if nb % g:
            continue
        if (g * din) % _LANE or (g * dout) % _LANE:
            continue
        if pack_w_bytes(g) <= budget_bytes // 3:
            return g
    return None


def _pick_block_m(batch, step_bytes_fn, budget_bytes, cap_rows=512):
    """Batch tile: multiple of 8, as big as the VMEM budget allows."""
    bm = min(_round_up(batch, _SUBLANE), cap_rows)
    bm = _round_up(bm, _SUBLANE)
    while bm > _SUBLANE and step_bytes_fn(bm) > budget_bytes:
        bm = max(_SUBLANE, (bm // 2) // _SUBLANE * _SUBLANE)
    # Keep batch zero-padding at <= 12.5% of the (8-rounded) batch.
    batch8 = _round_up(batch, _SUBLANE)
    while bm > _SUBLANE and (_round_up(batch8, bm) - batch8) * 8 > batch8:
        bm = max(_SUBLANE, (bm // 2) // _SUBLANE * _SUBLANE)
    return bm


def _block_diag_weight(weight, block_g):
    """(nb, din, dout) -> (nb//G, G*din, G*dout) block-diagonal packs."""
    nb, din, dout = weight.shape
    n_packs = nb // block_g
    w = weight.reshape(n_packs, block_g, din, dout)
    eye = jnp.eye(block_g, dtype=weight.dtype)
    # out[p, g*din + a, h*dout + c] = w[p, g, a, c] if g == h else 0
    wbd = jnp.einsum("pgac,gh->pgahc", w, eye)
    return wbd.reshape(n_packs, block_g * din, block_g * dout)


def _packed_kernel(x_ref, w_ref, b_ref, o_ref):
    # x_ref: (TM, G*din), w_ref: (1, G*din, G*dout) block-diagonal,
    # b_ref: (1, G*dout), o_ref: (TM, G*dout).  One wide MXU matmul and one
    # lane-dense store per grid step.
    o_ref[...] = (jnp.dot(x_ref[...], w_ref[0],
                          preferred_element_type=jnp.float32)
                  + b_ref[...]).astype(o_ref.dtype)


def _make_grouped_kernel(block_g, din, dout):
    def kernel(x_ref, w_ref, b_ref, o_ref):
        # Per-group Ref slices + direct per-group stores: no materialized x
        # slab, no ys list, no jnp.concatenate.  Live ranges end immediately
        # and vst interleaves with vmatmul instead of an epilogue store burst.
        for g in range(block_g):                              # static unroll
            y_g = jnp.dot(x_ref[:, g * din:(g + 1) * din], w_ref[g],
                          preferred_element_type=jnp.float32)
            o_ref[:, g * dout:(g + 1) * dout] = (
                y_g + b_ref[:, g * dout:(g + 1) * dout]).astype(o_ref.dtype)
    return kernel


def group_linear(x, weight, bias=None):
    """x: (batch, nb, din), weight: (nb, din, dout), bias: (nb, dout) or None."""
    batch, nb, din = x.shape
    dout = weight.shape[-1]
    if bias is None:
        bias = jnp.zeros((nb, dout), dtype=x.dtype)

    itemsize = jnp.dtype(x.dtype).itemsize
    cap = _vmem_capacity_bytes()
    budget = int(cap * 0.40)        # tiling budget for the picker
    vmem_limit = int(cap * 0.65)    # leaves headroom for Mosaic scratch

    # ---- choose the kernel body and the per-step group count --------------
    packed = din < _LANE and dout < _LANE
    block_g = _pick_pack_size(nb, din, dout, itemsize, budget) if packed else None
    if block_g is None:
        packed = False
        if din % _LANE == 0 and dout % _LANE == 0:
            # Partial flattened blocks stay 128-lane aligned for any block_g.
            block_g = nb
            while block_g > 1 and (block_g * _padded_tile_bytes((din, dout), itemsize)
                                   > budget // 3):
                block_g = max(1, block_g // 2)
            while nb % block_g:
                block_g -= 1
        else:
            # Full-dim blocks are exempt from the alignment rule.
            block_g = nb
        # TODO(synk): add a din (K) grid axis + f32 VMEM accumulator for very
        # large din instead of shrinking block_m (matters most on v7x 64 MiB).

    n_group_steps = nb // block_g

    # ---- choose the batch tile (padding-aware working-set estimate) -------
    if packed:
        def step_bytes(bm):
            return (2 * _padded_tile_bytes((bm, block_g * din), itemsize)        # x (dbl buf)
                    + 2 * _padded_tile_bytes((bm, block_g * dout), itemsize)     # out (dbl buf)
                    + _padded_tile_bytes((block_g * din, block_g * dout), itemsize)  # W (1 buf)
                    + _padded_tile_bytes((1, block_g * dout), itemsize))         # bias (1 buf)
    else:
        def step_bytes(bm):
            return (2 * _padded_tile_bytes((bm, block_g * din), itemsize)
                    + 2 * _padded_tile_bytes((bm, block_g * dout), itemsize)
                    + block_g * _padded_tile_bytes((din, dout), itemsize)
                    + _padded_tile_bytes((1, block_g * dout), itemsize))

    block_m = _pick_block_m(batch, step_bytes, budget)
    batch_p = _round_up(_round_up(batch, _SUBLANE), block_m)

    # v7x megacore: if the group-pack axis is degenerate, keep >= 2 batch
    # steps when there is enough work to split across the two TensorCores.
    if n_group_steps == 1 and batch_p // block_m < 2 and block_m >= 512:
        block_m //= 2
        batch_p = _round_up(_round_up(batch, _SUBLANE), block_m)

    grid = (n_group_steps, batch_p // block_m)   # groups outer, batch inner

    # ---- lane-dense HBM slabs (trailing-dim merges only, no transpose) ----
    x_flat = x.reshape(batch, nb * din)
    if batch_p != batch:
        x_flat = jnp.pad(x_flat, ((0, batch_p - batch), (0, 0)))
    b_flat = bias.reshape(1, nb * dout)

    if packed:
        w_arg = _block_diag_weight(weight, block_g)     # (nb//G, G*din, G*dout)
        kernel = _packed_kernel
        w_block = (1, block_g * din, block_g * dout)
    else:
        w_arg = weight
        kernel = _make_grouped_kernel(block_g, din, dout)
        w_block = (block_g, din, dout)

    flops = 2 * batch_p * nb * din * dout
    bytes_accessed = (batch_p * nb * din * itemsize
                      + w_arg.size * itemsize
                      + b_flat.size * itemsize
                      + batch_p * nb * dout * itemsize)

    def run(single_buffer_weights):
        def resident_spec(shape, idx):
            # Weight / bias blocks never change along the inner batch axis, so
            # their second pipeline buffer is dead VMEM -> single-buffer them.
            if single_buffer_weights:
                return pl.BlockSpec(shape, idx,
                                    pipeline_mode=pl.Buffered(buffer_count=1))
            return pl.BlockSpec(shape, idx)

        return pl.pallas_call(
            kernel,
            out_shape=jax.ShapeDtypeStruct((batch_p, nb * dout), x.dtype),
            grid_spec=pltpu.PrefetchScalarGridSpec(
                num_scalar_prefetch=0,
                grid=grid,
                in_specs=[
                    # x slab: new block per (group-pack i, batch-tile m)
                    pl.BlockSpec((block_m, block_g * din),
                                 lambda i, m: (m, i)),
                    # weight / bias: ignore the batch-tile index -> stay
                    # VMEM-resident across the whole inner batch loop.
                    resident_spec(w_block, lambda i, m: (i, 0, 0)),
                    resident_spec((1, block_g * dout), lambda i, m: (0, i)),
                ],
                out_specs=pl.BlockSpec((block_m, block_g * dout),
                                       lambda i, m: (m, i)),
            ),
            compiler_params=pltpu.CompilerParams(
                dimension_semantics=("parallel", "parallel"),
                vmem_limit_bytes=vmem_limit,
            ),
            cost_estimate=pl.CostEstimate(
                flops=flops, transcendentals=0,
                bytes_accessed=bytes_accessed),
        )(x_flat, w_arg, b_flat)

    try:
        out_flat = run(True)
    except Exception:
        # Fallback for JAX versions whose BlockSpec/lowering rejects
        # pipeline_mode: default double-buffered weight/bias specs.
        out_flat = run(False)

    return out_flat[:batch].reshape(batch, nb, dout)


def init_params(key, din, dout, num_blocks, a=None):
    if a is None:
        a = 1.0 / math.sqrt(dout)
    kw, kb = jax.random.split(key)
    weight = jax.random.uniform(kw, (num_blocks, din, dout),
                                minval=-a, maxval=a, dtype=jnp.float32)
    bias = jax.random.uniform(kb, (num_blocks, dout),
                              minval=-a, maxval=a, dtype=jnp.float32)
    return weight, bias


if __name__ == "__main__":
    # Small shapes consistent with the module's forward.
    batch, num_blocks, din, dout = 8, 4, 32, 32

    key = jax.random.PRNGKey(0)
    kx, kp = jax.random.split(key)
    x = jax.random.normal(kx, (batch, num_blocks, din), dtype=jnp.float32)
    weight, bias = init_params(kp, din, dout, num_blocks)

    y = group_linear(x, weight, bias)
    jax.block_until_ready(y)

    # Reference check (plain JAX, mirrors the PyTorch forward).
    ref = jnp.einsum("bnd,ndo->bno", x, weight) + bias[None, :, :]
    assert y.shape == ref.shape
    assert jnp.allclose(y, ref, atol=1e-5, rtol=1e-5)

    print("KERNEL_OK")
</pallas_src>

<mosaic_0001>
module attributes {stable_mosaic.version = 11 : i64} {
  func.func @_packed_kernel(%arg0: i32, %arg1: i32, %arg2: memref<8x128xf32, #tpu.memory_space<vmem>>, %arg3: memref<1x128x128xf32, #tpu.memory_space<vmem>>, %arg4: memref<1x128xf32, #tpu.memory_space<vmem>>, %arg5: memref<8x128xf32, #tpu.memory_space<vmem>>) attributes {dimension_semantics = [#tpu.dimension_semantics<parallel>, #tpu.dimension_semantics<parallel>], iteration_bounds = array<i64: 1, 1>, scalar_prefetch = 0 : i64, scratch_operands = 0 : i64, tpu.core_type = #tpu.core_type<tc>, window_params = [{transform_indices = @transform_0, window_bounds = array<i64: 8, 128>}, {pipeline_mode = #tpu.pipeline_mode<synchronous>, transform_indices = @transform_1, window_bounds = array<i64: 1, 128, 128>}, {pipeline_mode = #tpu.pipeline_mode<synchronous>, transform_indices = @transform_2, window_bounds = array<i64: 1, 128>}, {transform_indices = @transform_3, window_bounds = array<i64: 8, 128>}]} {
    %c0 = arith.constant 0 : index
    %c0_0 = arith.constant 0 : index
    %0 = vector.load %arg2[%c0, %c0_0] : memref<8x128xf32, #tpu.memory_space<vmem>>, vector<8x128xf32>
    %c0_1 = arith.constant 0 : index
    %c0_2 = arith.constant 0 : index
    %c0_3 = arith.constant 0 : index
    %1 = vector.load %arg3[%c0_1, %c0_2, %c0_3] : memref<1x128x128xf32, #tpu.memory_space<vmem>>, vector<1x128x128xf32>
    %2 = vector.shape_cast %1 : vector<1x128x128xf32> to vector<128x128xf32>
    %cst = arith.constant dense<0.000000e+00> : vector<8x128xf32>
    %3 = tpu.matmul %0, %2, %cst {dimension_numbers = #tpu.dot_dimension_numbers<[1], [0], [0], [1], [0, 0, 1, 1], [], []>} : vector<8x128xf32>, vector<128x128xf32>, vector<8x128xf32> -> vector<8x128xf32>
    %c0_4 = arith.constant 0 : index
    %c0_5 = arith.constant 0 : index
    %4 = vector.load %arg4[%c0_4, %c0_5] : memref<1x128xf32, #tpu.memory_space<vmem>>, vector<1x128xf32>
    %5 = vector.broadcast %4 : vector<1x128xf32> to vector<8x128xf32>
    %6 = arith.addf %3, %5 : vector<8x128xf32>
    %c0_6 = arith.constant 0 : index
    %c0_7 = arith.constant 0 : index
    %7 = vector.load %arg5[%c0_6, %c0_7] : memref<8x128xf32, #tpu.memory_space<vmem>>, vector<8x128xf32>
    tpu.vector_store %arg5[%c0_6, %c0_7], %6 {strides = array<i32>} : memref<8x128xf32, #tpu.memory_space<vmem>>, vector<8x128xf32>,
    return
  }
  func.func @transform_0(%arg0: i32, %arg1: i32) -> (i32, i32) {
    %c0_i32 = arith.constant 0 : i32
    return %arg1, %arg0 : i32, i32
  }
  func.func @transform_1(%arg0: i32, %arg1: i32) -> (i32, i32, i32) {
    %c0_i32 = arith.constant 0 : i32
    %c0_i32_0 = arith.constant 0 : i32
    %c0_i32_1 = arith.constant 0 : i32
    return %arg0, %c0_i32, %c0_i32_0 : i32, i32, i32
  }
  func.func @transform_2(%arg0: i32, %arg1: i32) -> (i32, i32) {
    %c0_i32 = arith.constant 0 : i32
    %c0_i32_0 = arith.constant 0 : i32
    return %c0_i32, %arg0 : i32, i32
  }
  func.func @transform_3(%arg0: i32, %arg1: i32) -> (i32, i32) {
    %c0_i32 = arith.constant 0 : i32
    return %arg1, %arg0 : i32, i32
  }
}

module attributes {stable_mosaic.version = 11 : i64} {
  func.func @_packed_kernel(%arg0: i32, %arg1: i32, %arg2: memref<8x128xf32, #tpu.memory_space<vmem>>, %arg3: memref<1x128x128xf32, #tpu.memory_space<vmem>>, %arg4: memref<1x128xf32, #tpu.memory_space<vmem>>, %arg5: memref<8x128xf32, #tpu.memory_space<vmem>>) attributes {dimension_semantics = [#tpu.dimension_semantics<parallel>, #tpu.dimension_semantics<parallel>], iteration_bounds = array<i64: 1, 1>, scalar_prefetch = 0 : i64, scratch_operands = 0 : i64, tpu.core_type = #tpu.core_type<tc>, window_params = [{transform_indices = @transform_0, window_bounds = array<i64: 8, 128>}, {transform_indices = @transform_1, window_bounds = array<i64: 1, 128, 128>}, {transform_indices = @transform_2, window_bounds = array<i64: 1, 128>}, {transform_indices = @transform_3, window_bounds = array<i64: 8, 128>}]} {
    %c0 = arith.constant 0 : index
    %c0_0 = arith.constant 0 : index
    %0 = vector.load %arg2[%c0, %c0_0] : memref<8x128xf32, #tpu.memory_space<vmem>>, vector<8x128xf32>
    %c0_1 = arith.constant 0 : index
    %c0_2 = arith.constant 0 : index
    %c0_3 = arith.constant 0 : index
    %1 = vector.load %arg3[%c0_1, %c0_2, %c0_3] : memref<1x128x128xf32, #tpu.memory_space<vmem>>, vector<1x128x128xf32>
    %2 = vector.shape_cast %1 : vector<1x128x128xf32> to vector<128x128xf32>
    %cst = arith.constant dense<0.000000e+00> : vector<8x128xf32>
    %3 = tpu.matmul %0, %2, %cst {dimension_numbers = #tpu.dot_dimension_numbers<[1], [0], [0], [1], [0, 0, 1, 1], [], []>} : vector<8x128xf32>, vector<128x128xf32>, vector<8x128xf32> -> vector<8x128xf32>
    %c0_4 = arith.constant 0 : index
    %c0_5 = arith.constant 0 : index
    %4 = vector.load %arg4[%c0_4, %c0_5] : memref<1x128xf32, #tpu.memory_space<vmem>>, vector<1x128xf32>
    %5 = vector.broadcast %4 : vector<1x128xf32> to vector<8x128xf32>
    %6 = arith.addf %3, %5 : vector<8x128xf32>
    %c0_6 = arith.constant 0 : index
    %c0_7 = arith.constant 0 : index
    %7 = vector.load %arg5[%c0_6, %c0_7] : memref<8x128xf32, #tpu.memory_space<vmem>>, vector<8x128xf32>
    tpu.vector_store %arg5[%c0_6, %c0_7], %6 {strides = array<i32>} : memref<8x128xf32, #tpu.memory_space<vmem>>, vector<8x128xf32>,
    return
  }
  func.func @transform_0(%arg0: i32, %arg1: i32) -> (i32, i32) {
    %c0_i32 = arith.constant 0 : i32
    return %arg1, %arg0 : i32, i32
  }
  func.func @transform_1(%arg0: i32, %arg1: i32) -> (i32, i32, i32) {
    %c0_i32 = arith.constant 0 : i32
    %c0_i32_0 = arith.constant 0 : i32
    %c0_i32_1 = arith.constant 0 : i32
    return %arg0, %c0_i32, %c0_i32_0 : i32, i32, i32
  }
  func.func @transform_2(%arg0: i32, %arg1: i32) -> (i32, i32) {
    %c0_i32 = arith.constant 0 : i32
    %c0_i32_0 = arith.constant 0 : i32
    return %c0_i32, %arg0 : i32, i32
  }
  func.func @transform_3(%arg0: i32, %arg1: i32) -> (i32, i32) {
    %c0_i32 = arith.constant 0 : i32
    return %arg1, %arg0 : i32, i32
  }
}

</mosaic_0001>

<bundles_post_ra>
// kernel: tpu_custom_call.1
= control target key start
LH: loop header
LB: loop body
LE: loop exit
PB: predicated region body
PF: predicated region fallthrough
CT: control target
= control target key end

     0   :  { %8 = vsyncpa [#allocation3], 0  ;;  %s383_s0 = inlined_call_operand.hbm [shape: f32[8,128], index: 0, kind: input, shape index: {}]   ;;  %s384_s1 = inlined_call_operand.hbm [shape: f32[1,128,128], index: 1, kind: input, shape index: {}]   ;;  %s385_s2 = inlined_call_operand.vmem [shape: f32[1,128], index: 2, kind: input, shape index: {}]   ;;  %s386_s3 = inlined_call_operand.hbm [shape: f32[8,128], index: 3, kind: output, shape index: {}]  }
   0x1   :  { %9 = vsyncpa [#allocation6], 0 }
   0x2   :  { %10 = vsyncpa [#allocation4], 0  ;;  %s309_s12 = smov [#allocation2]   ;;  %s310_s14 = smov [#allocation5]  }
   0x3   :  { %s17_s13 = sshll.u32 %s309_s12, 4  ;;  %s26_s15 = sshll.u32 %s310_s14, 4  ;;  %s18_s13 = int_to_ptr.vmem [resolvable:$true] %s17_s13  ;;  %s337_s15 = int_to_ptr.vmem [resolvable:$true] %s26_s15 }
   0x4   :  { %s237_s18 = scalar_lea.hbm %s383_s0, 128 }
   0x5   :  { %p238_p0 = scmp.ne.s32.totalorder %s383_s0, %s237_s18  ;;  %p241_p1 = scmp.lt.u32.totalorder %s237_s18, %s383_s0 }
   0x7   :  { %p243_p2 = pnand %p241_p1, %p238_p0 }
   0x9   :  { %246 = shalt.err (!%p243_p2)
}
   0xa   :  { %s247_s23 = scalar_lea.vmem %s18_s13, 128  ;;  %p252_p4 = scmp.lt.s32.totalorder %s18_s13, %s18_s13 }
   0xb   :  { %p248_p3 = scmp.ne.s32.totalorder %s18_s13, %s247_s23  ;;  %p253_p5 = scmp.lt.s32.totalorder %s247_s23, %s247_s23 }
   0xd   :  { %p254_p6 = por %p253_p5, %p252_p4 }
   0xf   :  { %p255_p7 = pnand %p254_p6, %p248_p3 }
  0x11   :  { %258 = shalt.err (!%p255_p7)
}
  0x12   :  { %20 = dma.hbm_to_vmem [thread:$0]  %s383_s0, 128, %s18_s13, [#allocation3]  }
  0x13   :  { %s259_s28 = scalar_lea.hbm %s384_s1, 2048 }
  0x14   :  { %p260_p8 = scmp.ne.s32.totalorder %s384_s1, %s259_s28  ;;  %p263_p9 = scmp.lt.u32.totalorder %s259_s28, %s384_s1 }
  0x16   :  { %p265_p10 = pnand %p263_p9, %p260_p8 }
  0x18   :  { %268 = shalt.err (!%p265_p10)
}
  0x19   :  { %s269_s6 = scalar_lea.vmem %s337_s15, 2048  ;;  %p274_p12 = scmp.lt.s32.totalorder %s337_s15, %s337_s15 }
  0x1a   :  { %p270_p11 = scmp.ne.s32.totalorder %s337_s15, %s269_s6  ;;  %p275_p13 = scmp.lt.s32.totalorder %s269_s6, %s269_s6 }
  0x1c   :  { %p276_p0 = por %p275_p13, %p274_p12 }
  0x1e   :  { %p277_p1 = pnand %p276_p0, %p270_p11 }
  0x20   :  { %280 = shalt.err (!%p277_p1)
}
  0x21   :  { %s311_s0 = smov 128   ;;  %s312_s7 = smov 8  }
  0x22   :  { %32 = dma.hbm_to_vmem [thread:$0]  %s384_s1, 2048, %s337_s15, [#allocation6], %s311_s0, %s311_s0, %s312_s7  }
  0x23   :  { %303 = dma.done.wait [#allocation3], 128  }
  0x24   :  { %304 = vsyncadd [#allocation3], 4294967168 }
  0x25   :  { %305 = dma.done.wait [#allocation6], 2048  }
  0x26   :  { %306 = vsyncadd [#allocation6], 4294965248  ;;  %v313_v0 = vmov 0.0|0.0   ;;  %vm314_vm0 = vmmov 0   ;;  %v315_v1 = vmov 0.0   ;;  %v42_v2 = vld [vmem:[#allocation5] sm:$0xff] }
  0x27   :  { %205 = vmatprep.subr.bf16.mxu0 %v313_v0  ;;  %202 = vmatprep.mubr.msk.f32.mxu0 %vm314_vm0, %v315_v1  ;;  %v43_v3 = vld [vmem:[#allocation5 + $0x8] sm:$0xff]  ;;  %v44_v4 = vld [vmem:[#allocation5 + $0x10] sm:$0xff]  ;;  %v45_v6 = vld [vmem:[#allocation5 + $0x18] sm:$0xff]  ;;  %s316_s11 = smov [#allocation7]  }
  0x28   :  { %v206_v5 = vpack.c.bf16 %v43_v3, %v42_v2  ;;  %v209_v7 = vpack.c.bf16 %v45_v6, %v44_v4  ;;  %v46_v8 = vld [vmem:[#allocation5 + $0x20] sm:$0xff]  ;;  %v47_v9 = vld [vmem:[#allocation5 + $0x28] sm:$0xff]  ;;  %v48_v11 = vld [vmem:[#allocation5 + $0x30] sm:$0xff]  ;;  %s142_s12 = sshll.u32 %s316_s11, 4  ;;  %s143_s12 = int_to_ptr.vmem [resolvable:$true] %s142_s12 }
  0x29   :  { %v212_v10 = vpack.c.bf16 %v47_v9, %v46_v8  ;;  %v49_v12 = vld [vmem:[#allocation5 + $0x38] sm:$0xff]  ;;  %v50_v14 = vld [vmem:[#allocation5 + $0x40] sm:$0xff]  ;;  %v51_v15 = vld [vmem:[#allocation5 + $0x48] sm:$0xff]  ;;  %s281_s13 = scalar_lea.vmem %s143_s12, 128  ;;  %p286_p3 = scmp.lt.s32.totalorder %s143_s12, %s143_s12 }
  0x2a   :  { %207 = vmatpush3.bf16.msra.mxu0 %v206_v5  ;;  %v215_v13 = vpack.c.bf16 %v49_v12, %v48_v11  ;;  %v218_v16 = vpack.c.bf16 %v51_v15, %v50_v14  ;;  %v52_v17 = vld [vmem:[#allocation5 + $0x50] sm:$0xff]  ;;  %v53_v18 = vld [vmem:[#allocation5 + $0x58] sm:$0xff]  ;;  %v54_v20 = vld [vmem:[#allocation5 + $0x60] sm:$0xff]  ;;  %p282_p2 = scmp.ne.s32.totalorder %s143_s12, %s281_s13  ;;  %p287_p4 = scmp.lt.s32.totalorder %s281_s13, %s281_s13 }
  0x2b   :  { %208 = vmatprep.subr.bf16.mxu0 %v313_v0  ;;  %v221_v19 = vpack.c.bf16 %v53_v18, %v52_v17  ;;  %v55_v21 = vld [vmem:[#allocation5 + $0x68] sm:$0xff]  ;;  %v56_v23 = vld [vmem:[#allocation5 + $0x70] sm:$0xff]  ;;  %v57_v24 = vld [vmem:[#allocation5 + $0x78] sm:$0xff] }
  0x2c   :  { %v224_v22 = vpack.c.bf16 %v55_v21, %v54_v20  ;;  %v227_v25 = vpack.c.bf16 %v57_v24, %v56_v23  ;;  %v41_v26 = vld [vmem:[#allocation2] sm:$0xff]  ;;  %p288_p5 = por %p287_p4, %p286_p3 }
  0x2d   :  { %v152_v27 = vld [vmem:[%s385_s2] ss:$0 sm:$0xff] }
  0x2e   :  { %210 = vmatpush3.bf16.msra.mxu0 %v209_v7  ;;  %p289_p6 = pnand %p288_p5, %p282_p2 }
  0x2f   :  { %211 = vmatprep.subr.bf16.mxu0 %v313_v0 }
  0x32   :  { %213 = vmatpush3.bf16.msra.mxu0 %v212_v10 }
  0x33   :  { %214 = vmatprep.subr.bf16.mxu0 %v313_v0 }
  0x36   :  { %216 = vmatpush3.bf16.msra.mxu0 %v215_v13 }
  0x37   :  { %217 = vmatprep.subr.bf16.mxu0 %v313_v0 }
  0x3a   :  { %219 = vmatpush3.bf16.msra.mxu0 %v218_v16 }
  0x3b   :  { %220 = vmatprep.subr.bf16.mxu0 %v313_v0 }
  0x3e   :  { %222 = vmatpush3.bf16.msra.mxu0 %v221_v19 }
  0x3f   :  { %223 = vmatprep.subr.bf16.mxu0 %v313_v0 }
  0x42   :  { %225 = vmatpush3.bf16.msra.mxu0 %v224_v22 }
  0x43   :  { %226 = vmatprep.subr.bf16.mxu0 %v313_v0 }
  0x46   :  { %228 = vmatpush3.bf16.msra.mxu0 %v227_v25 }
  0x49   :  { %203 = vmatmul.mubr.f32.vlgmr.msra.gmra.mrb[0].mxu0 %v41_v26 }
 0x11c   :  { %v131_v28 = vpop.f32.mrb[0].mxu0 }
 0x11d   :  { %v132_v29 = vadd.f32 %v152_v27, %v131_v28  ;;  %v204_v30 = vpop.f32.mrb[1].mxu0 }
 0x11f   :  { %135 = vst [vmem:[#allocation7] sm:$0xff] %v132_v29 }
 0x120   :  { %292 = shalt.err (!%p289_p6)
}
 0x121   :  { %s293_s16 = scalar_lea.hbm %s386_s3, 128 }
 0x122   :  { %p294_p7 = scmp.ne.s32.totalorder %s386_s3, %s293_s16  ;;  %p297_p8 = scmp.lt.u32.totalorder %s293_s16, %s386_s3 }
 0x124   :  { %p299_p9 = pnand %p297_p8, %p294_p7 }
 0x126   :  { %302 = shalt.err (!%p299_p9)
}
 0x127   :  { %145 = dma.vmem_to_hbm [thread:$0]  %s143_s12, 128, %s386_s3, [#allocation4]  }
 0x128   :  { %307 = dma.done.wait [#allocation4], 128  }
 0x129   :  { %308 = vsyncadd [#allocation4], 4294967168 }
 0x12a   :  { %149 = vsyncpa [#allocation3], 1 }
 0x12b   :  { %150 = vsyncpa [#allocation6], 1 }
 0x12c   :  { %151 = vsyncpa [#allocation4], 1 }

// kernel: tpu_custom_call.1
= control target key start
LH: loop header
LB: loop body
LE: loop exit
PB: predicated region body
PF: predicated region fallthrough
CT: control target
= control target key end

     0   :  { %8 = vsyncpa [#allocation3], 0  ;;  %s383_s0 = inlined_call_operand.hbm [shape: f32[8,128], index: 0, kind: input, shape index: {}]   ;;  %s384_s1 = inlined_call_operand.hbm [shape: f32[1,128,128], index: 1, kind: input, shape index: {}]   ;;  %s385_s2 = inlined_call_operand.vmem [shape: f32[1,128], index: 2, kind: input, shape index: {}]   ;;  %s386_s3 = inlined_call_operand.hbm [shape: f32[8,128], index: 3, kind: output, shape index: {}]  }
   0x1   :  { %9 = vsyncpa [#allocation6], 0 }
   0x2   :  { %10 = vsyncpa [#allocation4], 0  ;;  %s309_s12 = smov [#allocation2]   ;;  %s310_s14 = smov [#allocation5]  }
   0x3   :  { %s17_s13 = sshll.u32 %s309_s12, 4  ;;  %s26_s15 = sshll.u32 %s310_s14, 4  ;;  %s18_s13 = int_to_ptr.vmem [resolvable:$true] %s17_s13  ;;  %s337_s15 = int_to_ptr.vmem [resolvable:$true] %s26_s15 }
   0x4   :  { %s237_s18 = scalar_lea.hbm %s383_s0, 128 }
   0x5   :  { %p238_p0 = scmp.ne.s32.totalorder %s383_s0, %s237_s18  ;;  %p241_p1 = scmp.lt.u32.totalorder %s237_s18, %s383_s0 }
   0x7   :  { %p243_p2 = pnand %p241_p1, %p238_p0 }
   0x9   :  { %246 = shalt.err (!%p243_p2)
}
   0xa   :  { %s247_s23 = scalar_lea.vmem %s18_s13, 128  ;;  %p252_p4 = scmp.lt.s32.totalorder %s18_s13, %s18_s13 }
   0xb   :  { %p248_p3 = scmp.ne.s32.totalorder %s18_s13, %s247_s23  ;;  %p253_p5 = scmp.lt.s32.totalorder %s247_s23, %s247_s23 }
   0xd   :  { %p254_p6 = por %p253_p5, %p252_p4 }
   0xf   :  { %p255_p7 = pnand %p254_p6, %p248_p3 }
  0x11   :  { %258 = shalt.err (!%p255_p7)
}
  0x12   :  { %20 = dma.hbm_to_vmem [thread:$0]  %s383_s0, 128, %s18_s13, [#allocation3]  }
  0x13   :  { %s259_s28 = scalar_lea.hbm %s384_s1, 2048 }
  0x14   :  { %p260_p8 = scmp.ne.s32.totalorder %s384_s1, %s259_s28  ;;  %p263_p9 = scmp.lt.u32.totalorder %s259_s28, %s384_s1 }
  0x16   :  { %p265_p10 = pnand %p263_p9, %p260_p8 }
  0x18   :  { %268 = shalt.err (!%p265_p10)
}
  0x19   :  { %s269_s6 = scalar_lea.vmem %s337_s15, 2048  ;;  %p274_p12 = scmp.lt.s32.totalorder %s337_s15, %s337_s15 }
  0x1a   :  { %p270_p11 = scmp.ne.s32.totalorder %s337_s15, %s269_s6  ;;  %p275_p13 = scmp.lt.s32.totalorder %s269_s6, %s269_s6 }
  0x1c   :  { %p276_p0 = por %p275_p13, %p274_p12 }
  0x1e   :  { %p277_p1 = pnand %p276_p0, %p270_p11 }
  0x20   :  { %280 = shalt.err (!%p277_p1)
}
  0x21   :  { %s311_s0 = smov 128   ;;  %s312_s7 = smov 8  }
  0x22   :  { %32 = dma.hbm_to_vmem [thread:$0]  %s384_s1, 2048, %s337_s15, [#allocation6], %s311_s0, %s311_s0, %s312_s7  }
  0x23   :  { %303 = dma.done.wait [#allocation3], 128  }
  0x24   :  { %304 = vsyncadd [#allocation3], 4294967168 }
  0x25   :  { %305 = dma.done.wait [#allocation6], 2048  }
  0x26   :  { %306 = vsyncadd [#allocation6], 4294965248  ;;  %v313_v0 = vmov 0.0|0.0   ;;  %vm314_vm0 = vmmov 0   ;;  %v315_v1 = vmov 0.0   ;;  %v42_v2 = vld [vmem:[#allocation5] sm:$0xff] }
  0x27   :  { %205 = vmatprep.subr.bf16.mxu0 %v313_v0  ;;  %202 = vmatprep.mubr.msk.f32.mxu0 %vm314_vm0, %v315_v1  ;;  %v43_v3 = vld [vmem:[#allocation5 + $0x8] sm:$0xff]  ;;  %v44_v4 = vld [vmem:[#allocation5 + $0x10] sm:$0xff]  ;;  %v45_v6 = vld [vmem:[#allocation5 + $0x18] sm:$0xff]  ;;  %s316_s11 = smov [#allocation7]  }
  0x28   :  { %v206_v5 = vpack.c.bf16 %v43_v3, %v42_v2  ;;  %v209_v7 = vpack.c.bf16 %v45_v6, %v44_v4  ;;  %v46_v8 = vld [vmem:[#allocation5 + $0x20] sm:$0xff]  ;;  %v47_v9 = vld [vmem:[#allocation5 + $0x28] sm:$0xff]  ;;  %v48_v11 = vld [vmem:[#allocation5 + $0x30] sm:$0xff]  ;;  %s142_s12 = sshll.u32 %s316_s11, 4  ;;  %s143_s12 = int_to_ptr.vmem [resolvable:$true] %s142_s12 }
  0x29   :  { %v212_v10 = vpack.c.bf16 %v47_v9, %v46_v8  ;;  %v49_v12 = vld [vmem:[#allocation5 + $0x38] sm:$0xff]  ;;  %v50_v14 = vld [vmem:[#allocation5 + $0x40] sm:$0xff]  ;;  %v51_v15 = vld [vmem:[#allocation5 + $0x48] sm:$0xff]  ;;  %s281_s13 = scalar_lea.vmem %s143_s12, 128  ;;  %p286_p3 = scmp.lt.s32.totalorder %s143_s12, %s143_s12 }
  0x2a   :  { %207 = vmatpush3.bf16.msra.mxu0 %v206_v5  ;;  %v215_v13 = vpack.c.bf16 %v49_v12, %v48_v11  ;;  %v218_v16 = vpack.c.bf16 %v51_v15, %v50_v14  ;;  %v52_v17 = vld [vmem:[#allocation5 + $0x50] sm:$0xff]  ;;  %v53_v18 = vld [vmem:[#allocation5 + $0x58] sm:$0xff]  ;;  %v54_v20 = vld [vmem:[#allocation5 + $0x60] sm:$0xff]  ;;  %p282_p2 = scmp.ne.s32.totalorder %s143_s12, %s281_s13  ;;  %p287_p4 = scmp.lt.s32.totalorder %s281_s13, %s281_s13 }
  0x2b   :  { %208 = vmatprep.subr.bf16.mxu0 %v313_v0  ;;  %v221_v19 = vpack.c.bf16 %v53_v18, %v52_v17  ;;  %v55_v21 = vld [vmem:[#allocation5 + $0x68] sm:$0xff]  ;;  %v56_v23 = vld [vmem:[#allocation5 + $0x70] sm:$0xff]  ;;  %v57_v24 = vld [vmem:[#allocation5 + $0x78] sm:$0xff] }
  0x2c   :  { %v224_v22 = vpack.c.bf16 %v55_v21, %v54_v20  ;;  %v227_v25 = vpack.c.bf16 %v57_v24, %v56_v23  ;;  %v41_v26 = vld [vmem:[#allocation2] sm:$0xff]  ;;  %p288_p5 = por %p287_p4, %p286_p3 }
  0x2d   :  { %v152_v27 = vld [vmem:[%s385_s2] ss:$0 sm:$0xff] }
  0x2e   :  { %210 = vmatpush3.bf16.msra.mxu0 %v209_v7  ;;  %p289_p6 = pnand %p288_p5, %p282_p2 }
  0x2f   :  { %211 = vmatprep.subr.bf16.mxu0 %v313_v0 }
  0x32   :  { %213 = vmatpush3.bf16.msra.mxu0 %v212_v10 }
  0x33   :  { %214 = vmatprep.subr.bf16.mxu0 %v313_v0 }
  0x36   :  { %216 = vmatpush3.bf16.msra.mxu0 %v215_v13 }
  0x37   :  { %217 = vmatprep.subr.bf16.mxu0 %v313_v0 }
  0x3a   :  { %219 = vmatpush3.bf16.msra.mxu0 %v218_v16 }
  0x3b   :  { %220 = vmatprep.subr.bf16.mxu0 %v313_v0 }
  0x3e   :  { %222 = vmatpush3.bf16.msra.mxu0 %v221_v19 }
  0x3f   :  { %223 = vmatprep.subr.bf16.mxu0 %v313_v0 }
  0x42   :  { %225 = vmatpush3.bf16.msra.mxu0 %v224_v22 }
  0x43   :  { %226 = vmatprep.subr.bf16.mxu0 %v313_v0 }
  0x46   :  { %228 = vmatpush3.bf16.msra.mxu0 %v227_v25 }
  0x49   :  { %203 = vmatmul.mubr.f32.vlgmr.msra.gmra.mrb[0].mxu0 %v41_v26 }
 0x11c   :  { %v131_v28 = vpop.f32.mrb[0].mxu0 }
 0x11d   :  { %v132_v29 = vadd.f32 %v152_v27, %v131_v28  ;;  %v204_v30 = vpop.f32.mrb[1].mxu0 }
 0x11f   :  { %135 = vst [vmem:[#allocation7] sm:$0xff] %v132_v29 }
 0x120   :  { %292 = shalt.err (!%p289_p6)
}
 0x121   :  { %s293_s16 = scalar_lea.hbm %s386_s3, 128 }
 0x122   :  { %p294_p7 = scmp.ne.s32.totalorder %s386_s3, %s293_s16  ;;  %p297_p8 = scmp.lt.u32.totalorder %s293_s16, %s386_s3 }
 0x124   :  { %p299_p9 = pnand %p297_p8, %p294_p7 }
 0x126   :  { %302 = shalt.err (!%p299_p9)
}
 0x127   :  { %145 = dma.vmem_to_hbm [thread:$0]  %s143_s12, 128, %s386_s3, [#allocation4]  }
 0x128   :  { %307 = dma.done.wait [#allocation4], 128  }
 0x129   :  { %308 = vsyncadd [#allocation4], 4294967168 }
 0x12a   :  { %149 = vsyncpa [#allocation3], 1 }
 0x12b   :  { %150 = vsyncpa [#allocation6], 1 }
 0x12c   :  { %151 = vsyncpa [#allocation4], 1 }

</bundles_post_ra>
